<compile_context>
chip_gen: v6e
topology: v6e:2x2x1
jax: 0.10.0
libtpu: 0.0.40
codegen_flags: <defaults>
</compile_context>

<pallas_src>
import functools

import numpy as np
import jax
import jax.numpy as jnp
from jax.experimental import pallas as pl
from jax.experimental.pallas import tpu as pltpu


def _cdiv(a, b):
    return -(-a // b)


def _round_up(x, m):
    return ((x + m - 1) // m) * m


def _vmem_capacity_bytes():
    """Physical VMEM of the attached TPU generation (fallback: 128 MiB)."""
    try:
        cap = int(getattr(pltpu.get_tpu_info(), "vmem_capacity_bytes", 0))
        if cap > 0:
            return cap
    except Exception:
        pass
    return 128 << 20


def _layer_norm_full(v, g_ref, beta_ref, eps):
    """LayerNorm over the last dim of a full (tile_m, H) f32 row block."""
    g = g_ref[...].astype(jnp.float32)
    beta = beta_ref[...].astype(jnp.float32)
    mu = jnp.mean(v, axis=-1, keepdims=True)
    d = v - mu
    var = jnp.mean(d * d, axis=-1, keepdims=True)
    return d * jax.lax.rsqrt(var + eps) * g + beta


# ---------------------------------------------------------------------------
# Case 1: full-width (resident) weight block, n_tiles == 1. Grid = (row tiles,).
# ---------------------------------------------------------------------------
def _prepost_kernel_single(x_ref, w_ref, b_ref, g_ref, beta_ref, o_ref,
                           *, eps, normalize_before, lhs_dtype):
    x_f32 = x_ref[...].astype(jnp.float32)                      # (tm, H)

    if normalize_before:
        lhs = _layer_norm_full(x_f32, g_ref, beta_ref, eps).astype(lhs_dtype)
    else:
        lhs = x_ref[...].astype(lhs_dtype)

    h = jnp.dot(lhs, w_ref[...], preferred_element_type=jnp.float32)
    h = h + b_ref[...].astype(jnp.float32)
    # dropout == identity (eval mode); residual connection
    h = h + x_f32

    out = h if normalize_before else _layer_norm_full(h, g_ref, beta_ref, eps)
    o_ref[...] = out.astype(o_ref.dtype)


# ---------------------------------------------------------------------------
# Case 2: weight output-columns tiled (n_tiles > 1). Grid = (row tiles, col tiles).
#   * Matmul slabs accumulate into a leading-dim-indexed f32 scratch (no dynamic lane
#     indexing anywhere -- only static column slices in the unrolled finalize).
#   * Residual comes from the already-resident full-row x block (no duplicate x read).
#   * pre-norm : LN(x) computed once per row tile into an lhs scratch.
#     post-norm: x cast once per row tile into an lhs scratch when matmul dtype != x dtype;
#                finalize = 1 pass (residual + sum/sum-of-squares) + 1 pass (normalize).
# ---------------------------------------------------------------------------
def _prepost_kernel_ntiled(x_ref, w_ref, b_ref, g_ref, beta_ref, o_ref, acc_ref,
                           *maybe_lhs, eps, normalize_before, tile_n, n_tiles,
                           use_lhs_scratch):
    n = pl.program_id(1)

    if use_lhs_scratch:
        lhs_ref = maybe_lhs[0]

        @pl.when(n == 0)
        def _():
            x_f32 = x_ref[...].astype(jnp.float32)
            if normalize_before:
                lhs_ref[...] = _layer_norm_full(
                    x_f32, g_ref, beta_ref, eps).astype(lhs_ref.dtype)
            else:
                lhs_ref[...] = x_f32.astype(lhs_ref.dtype)     # one cast per row tile

        lhs = lhs_ref[...]
    else:
        lhs = x_ref[...]                                        # same dtype, no cast

    # h (without residual) for this column slab; acc_ref is (n_tiles, tile_m, tile_n) f32.
    acc_ref[n] = (jnp.dot(lhs, w_ref[...], preferred_element_type=jnp.float32)
                  + b_ref[...].astype(jnp.float32))

    @pl.when(n == n_tiles - 1)
    def _finalize():
        tm = acc_ref.shape[1]
        hdim = n_tiles * tile_n
        if normalize_before:
            # out = LN(x) @ W + b + x ; dropout == identity (eval mode)
            for j in range(n_tiles):                            # static unroll
                cols = slice(j * tile_n, (j + 1) * tile_n)
                o_ref[:, cols] = (acc_ref[j]
                                  + x_ref[:, cols].astype(jnp.float32)).astype(o_ref.dtype)
        else:
            g = g_ref[...].astype(jnp.float32)
            beta = beta_ref[...].astype(jnp.float32)
            s = jnp.zeros((tm, 1), jnp.float32)
            ss = jnp.zeros((tm, 1), jnp.float32)
            # pass 1: add residual, stash h back into acc, accumulate sum / sum-of-squares
            for j in range(n_tiles):
                cols = slice(j * tile_n, (j + 1) * tile_n)
                h = acc_ref[j] + x_ref[:, cols].astype(jnp.float32)
                acc_ref[j] = h
                s = s + jnp.sum(h, axis=-1, keepdims=True)
                ss = ss + jnp.sum(h * h, axis=-1, keepdims=True)
            mu = s * (1.0 / hdim)
            var = jnp.maximum(ss * (1.0 / hdim) - mu * mu, 0.0)
            inv = jax.lax.rsqrt(var + eps)
            # pass 2: normalize + affine
            for j in range(n_tiles):
                cols = slice(j * tile_n, (j + 1) * tile_n)
                o_ref[:, cols] = ((acc_ref[j] - mu) * inv * g[:, cols]
                                  + beta[:, cols]).astype(o_ref.dtype)


# ---------------------------------------------------------------------------
# Wrapper
# ---------------------------------------------------------------------------
def prepost_proc_layer(x, w, b, gamma, beta, *, eps=1e-5, normalize_before=False,
                       tile_m=None, tile_n=None, matmul_dtype="auto"):
    """x: (B, S, H); w: (H_in, H_out) linear weight; b/gamma/beta: (H,).

    matmul_dtype: "auto" keeps the native dtype when the (H,H) weight fits the VMEM
    residency budget, and casts the weight ONCE to bf16 (f32 accumulation, f32 LN) only
    when the weight would otherwise be re-streamed from HBM. Pass None to force the
    native dtype, or an explicit dtype (e.g. jnp.bfloat16) to force a cast.
    """
    B, S, H = x.shape
    assert w.shape == (H, H)
    M = B * S

    cap = _vmem_capacity_bytes()
    # Leave compiler/pipeline headroom: ~109 MiB on 128-MiB parts (v5e/v6e), ~52 MiB on v7x.
    vmem_limit = int(max(32 << 20, min(cap * 0.85, cap - (12 << 20))))
    # Budget for keeping the full weight resident in VMEM (~1/4 of physical capacity).
    weight_budget = max(8 << 20, cap // 4)

    # --- matmul dtype resolution -------------------------------------------------------
    if isinstance(matmul_dtype, str):
        assert matmul_dtype == "auto"
        if H * H * np.dtype(w.dtype).itemsize <= weight_budget:
            matmul_dtype = None                     # exact dtype, weight stays resident
        elif jnp.issubdtype(w.dtype, jnp.floating) and np.dtype(w.dtype).itemsize > 2:
            matmul_dtype = jnp.bfloat16             # halves the dominant weight HBM traffic
        else:
            matmul_dtype = None
    if matmul_dtype is not None and np.dtype(matmul_dtype) != np.dtype(w.dtype):
        w = w.astype(matmul_dtype)                  # one-time cast here, NOT per grid step
    lhs_dtype = np.dtype(matmul_dtype) if matmul_dtype is not None else np.dtype(w.dtype)

    x_itemsize = np.dtype(x.dtype).itemsize
    w_itemsize = np.dtype(w.dtype).itemsize
    lhs_itemsize = lhs_dtype.itemsize

    # --- weight column tiling: only when the full (H,H) block won't stay resident -------
    if tile_n is None:
        if H % 128 != 0 or H * H * w_itemsize <= weight_budget:
            tile_n = H
        else:
            gran = 256 if H % 256 == 0 else 128     # fill the 256-wide MXU on v6e/v7x
            tile_n = (weight_budget // (2 * H * w_itemsize)) // gran * gran
            tile_n = int(max(gran, min(tile_n, H)))
            while H % tile_n:
                tile_n -= gran
    assert H % tile_n == 0 and (tile_n == H or tile_n % 128 == 0), \
        "tile_n must divide H and be a multiple of 128 (or equal H)"
    n_tiles = H // tile_n

    # TODO(synk): masked-LN path so a non-128-multiple H could be padded and column-tiled.
    if n_tiles == 1 and H % 128 != 0 and 2 * H * H * w_itemsize > vmem_limit:
        raise ValueError(
            f"hidden size {H} is not a multiple of 128 and its (H,H) weight does not fit "
            f"VMEM; pad the hidden size to a multiple of 128.")

    use_lhs_scratch = normalize_before or (lhs_dtype != np.dtype(x.dtype))

    # --- row tiling: generation-aware target, balanced tiles, VMEM-fit shrink -----------
    if tile_m is None:
        tile_m = 512 if cap >= (96 << 20) else 256  # bigger tiles on 128-MiB VMEM parts
    # v7x has 2 TensorCores: keep >= 2 steps on the 'parallel' row axis when M allows.
    prefer_min_row_tiles = 2 if (cap <= (64 << 20) and M >= 256) else 1

    def _balanced(tm_target):
        n_row = max(prefer_min_row_tiles, _cdiv(M, max(16, tm_target)))
        tm = max(16, _round_up(_cdiv(M, n_row), 16))
        return tm, n_row

    def _est(tm):
        e = 2 * tm * H * x_itemsize                 # x row blocks (double-buffered)
        e += 2 * tm * H * x_itemsize                # output blocks (double-buffered)
        e += 2 * 3 * H * 4                          # bias / gamma / beta blocks
        if n_tiles == 1:
            e += 2 * H * H * w_itemsize             # resident weight (conservative 2x)
            e += 3 * tm * H * 4                     # f32 temporaries
        else:
            e += 2 * H * tile_n * w_itemsize        # weight column slabs (double-buffered)
            e += tm * H * 4                         # f32 accumulator scratch
            if use_lhs_scratch:
                e += tm * H * lhs_itemsize          # LN(x) / cast-x scratch
            e += tm * H * 4                         # f32 temporaries
        return e

    tm_target = int(tile_m)
    tile_m_eff, n_row = _balanced(tm_target)
    while _est(tile_m_eff) > vmem_limit and tile_m_eff > 128 and tm_target > 128:
        tm_target = max(128, tm_target // 2)        # shrink tiles rather than overflow VMEM
        tile_m_eff, n_row = _balanced(tm_target)
    M_pad = tile_m_eff * n_row

    x2 = x.reshape(M, H)
    if M_pad != M:
        x2 = jnp.pad(x2, ((0, M_pad - M), (0, 0)))
    b2 = b.reshape(1, H)
    g2 = gamma.reshape(1, H)
    beta2 = beta.reshape(1, H)

    if n_tiles == 1:
        kernel = functools.partial(_prepost_kernel_single, eps=eps,
                                   normalize_before=normalize_before,
                                   lhs_dtype=lhs_dtype)
        grid = (n_row,)
        in_specs = [
            pl.BlockSpec((tile_m_eff, H), lambda i: (i, 0)),    # x rows
            pl.BlockSpec((H, H), lambda i: (0, 0)),             # weight (resident, 1 fetch)
            pl.BlockSpec((1, H), lambda i: (0, 0)),             # bias
            pl.BlockSpec((1, H), lambda i: (0, 0)),             # LN gamma
            pl.BlockSpec((1, H), lambda i: (0, 0)),             # LN beta
        ]
        out_specs = pl.BlockSpec((tile_m_eff, H), lambda i: (i, 0))
        scratch_shapes = []
        dim_sem = ("parallel",)
    else:
        kernel = functools.partial(_prepost_kernel_ntiled, eps=eps,
                                   normalize_before=normalize_before,
                                   tile_n=tile_n, n_tiles=n_tiles,
                                   use_lhs_scratch=use_lhs_scratch)
        grid = (n_row, n_tiles)
        in_specs = [
            pl.BlockSpec((tile_m_eff, H), lambda i, n: (i, 0)),   # x rows (resident across n)
            pl.BlockSpec((H, tile_n), lambda i, n: (0, n)),       # weight column slab
            pl.BlockSpec((1, tile_n), lambda i, n: (0, n)),       # bias slab
            pl.BlockSpec((1, H), lambda i, n: (0, 0)),            # LN gamma
            pl.BlockSpec((1, H), lambda i, n: (0, 0)),            # LN beta
        ]
        out_specs = pl.BlockSpec((tile_m_eff, H), lambda i, n: (i, 0))
        scratch_shapes = [pltpu.VMEM((n_tiles, tile_m_eff, tile_n), jnp.float32)]
        if use_lhs_scratch:
            scratch_shapes.append(pltpu.VMEM((tile_m_eff, H), lhs_dtype))
        dim_sem = ("parallel", "arbitrary")

    weight_passes = 1 if n_tiles == 1 else n_row    # tiled weight is re-streamed per row tile
    cost = pl.CostEstimate(
        flops=2 * M_pad * H * H + 10 * M_pad * H,
        transcendentals=M_pad,
        bytes_accessed=int(2 * M_pad * H * x_itemsize
                           + weight_passes * H * H * w_itemsize + 3 * H * 4))

    out2 = pl.pallas_call(
        kernel,
        out_shape=jax.ShapeDtypeStruct((M_pad, H), x.dtype),
        grid_spec=pltpu.PrefetchScalarGridSpec(
            num_scalar_prefetch=0,
            grid=grid,
            in_specs=in_specs,
            out_specs=out_specs,
            scratch_shapes=scratch_shapes,
        ),
        compiler_params=pltpu.CompilerParams(
            dimension_semantics=dim_sem,
            vmem_limit_bytes=vmem_limit),
        cost_estimate=cost,
    )(x2, w, b2, g2, beta2)

    if M_pad != M:
        out2 = out2[:M]
    return out2.reshape(B, S, H)


# ---------------------------------------------------------------------------
# Reference + self-test
# ---------------------------------------------------------------------------
def _reference(x, w, b, gamma, beta, eps, normalize_before):
    x32 = x.astype(jnp.float32)
    w32 = w.astype(jnp.float32)

    def ln(v):
        mu = jnp.mean(v, axis=-1, keepdims=True)
        var = jnp.mean((v - mu) ** 2, axis=-1, keepdims=True)
        return (v - mu) / jnp.sqrt(var + eps) * gamma + beta

    if normalize_before:
        return (ln(x32) @ w32 + b) + x32
    return ln((x32 @ w32 + b) + x32)


if __name__ == "__main__":
    key = jax.random.PRNGKey(0)

    def run_case(k, B, S, H, normalize_before, tile_n=None, matmul_dtype="auto",
                 atol=1e-3, rtol=1e-3):
        k_x, k_w, k_b, k_g, k_be = jax.random.split(k, 5)
        x = jax.random.normal(k_x, (B, S, H), dtype=jnp.float32)
        w = jax.random.normal(k_w, (H, H), dtype=jnp.float32) * (H ** -0.5)
        b = 0.01 * jax.random.normal(k_b, (H,), dtype=jnp.float32)
        gamma = 1.0 + 0.1 * jax.random.normal(k_g, (H,), dtype=jnp.float32)
        beta = 0.1 * jax.random.normal(k_be, (H,), dtype=jnp.float32)

        out = prepost_proc_layer(x, w, b, gamma, beta, eps=1e-5,
                                 normalize_before=normalize_before,
                                 tile_n=tile_n, matmul_dtype=matmul_dtype)
        out = jax.block_until_ready(out)
        ref = _reference(x, w, b, gamma, beta, 1e-5, normalize_before)
        return bool(jnp.allclose(out, ref, atol=atol, rtol=rtol))

    keys = jax.random.split(key, 6)
    ok = True
    # Small shapes implied by the module: batch=2, seq=8, hidden=32 (resident weight path).
    ok &= run_case(keys[0], 2, 8, 32, normalize_before=False)
    ok &= run_case(keys[1], 2, 8, 32, normalize_before=True)
    # Forced weight column-tiling path (n_tiles > 1) for both norm modes, exact f32 matmul.
    ok &= run_case(keys[2], 2, 8, 256, normalize_before=False, tile_n=128, matmul_dtype=None)
    ok &= run_case(keys[3], 2, 8, 256, normalize_before=True, tile_n=128, matmul_dtype=None)
    # bf16 MXU-operand tiled path (f32 accumulation + f32 LN), looser tolerance.
    ok &= run_case(keys[4], 2, 8, 256, normalize_before=False, tile_n=128,
                   matmul_dtype=jnp.bfloat16, atol=0.1, rtol=0.1)
    # Non-divisible token count exercises balanced row padding + slicing.
    ok &= run_case(keys[5], 3, 7, 128, normalize_before=False)

    print("KERNEL_OK" if ok else "KERNEL_MISMATCH")
</pallas_src>

<mosaic_0001>
module attributes {stable_mosaic.version = 11 : i64} {
  func.func @_prepost_kernel_single(%arg0: i32, %arg1: memref<16x32xf32, #tpu.memory_space<vmem>>, %arg2: memref<32x32xf32, #tpu.memory_space<vmem>>, %arg3: memref<1x32xf32, #tpu.memory_space<vmem>>, %arg4: memref<1x32xf32, #tpu.memory_space<vmem>>, %arg5: memref<1x32xf32, #tpu.memory_space<vmem>>, %arg6: memref<16x32xf32, #tpu.memory_space<vmem>>) attributes {dimension_semantics = [#tpu.dimension_semantics<parallel>], iteration_bounds = array<i64: 1>, scalar_prefetch = 0 : i64, scratch_operands = 0 : i64, tpu.core_type = #tpu.core_type<tc>, window_params = [{transform_indices = @transform_0, window_bounds = array<i64: 16, 32>}, {pipeline_mode = #tpu.pipeline_mode<synchronous>, transform_indices = @transform_1, window_bounds = array<i64: 32, 32>}, {pipeline_mode = #tpu.pipeline_mode<synchronous>, transform_indices = @transform_2, window_bounds = array<i64: 1, 32>}, {pipeline_mode = #tpu.pipeline_mode<synchronous>, transform_indices = @transform_3, window_bounds = array<i64: 1, 32>}, {pipeline_mode = #tpu.pipeline_mode<synchronous>, transform_indices = @transform_4, window_bounds = array<i64: 1, 32>}, {transform_indices = @transform_5, window_bounds = array<i64: 16, 32>}]} {
    %c0 = arith.constant 0 : index
    %c0_0 = arith.constant 0 : index
    %0 = vector.load %arg1[%c0, %c0_0] : memref<16x32xf32, #tpu.memory_space<vmem>>, vector<16x32xf32>
    %c0_1 = arith.constant 0 : index
    %c0_2 = arith.constant 0 : index
    %1 = vector.load %arg1[%c0_1, %c0_2] : memref<16x32xf32, #tpu.memory_space<vmem>>, vector<16x32xf32>
    %c0_3 = arith.constant 0 : index
    %c0_4 = arith.constant 0 : index
    %2 = vector.load %arg2[%c0_3, %c0_4] : memref<32x32xf32, #tpu.memory_space<vmem>>, vector<32x32xf32>
    %cst = arith.constant dense<0.000000e+00> : vector<16x32xf32>
    %3 = tpu.matmul %1, %2, %cst {dimension_numbers = #tpu.dot_dimension_numbers<[1], [0], [0], [1], [0, 0, 1, 1], [], []>} : vector<16x32xf32>, vector<32x32xf32>, vector<16x32xf32> -> vector<16x32xf32>
    %c0_5 = arith.constant 0 : index
    %c0_6 = arith.constant 0 : index
    %4 = vector.load %arg3[%c0_5, %c0_6] : memref<1x32xf32, #tpu.memory_space<vmem>>, vector<1x32xf32>
    %5 = vector.broadcast %4 : vector<1x32xf32> to vector<16x32xf32>
    %6 = arith.addf %3, %5 : vector<16x32xf32>
    %7 = arith.addf %6, %0 : vector<16x32xf32>
    %c0_7 = arith.constant 0 : index
    %c0_8 = arith.constant 0 : index
    %8 = vector.load %arg4[%c0_7, %c0_8] : memref<1x32xf32, #tpu.memory_space<vmem>>, vector<1x32xf32>
    %c0_9 = arith.constant 0 : index
    %c0_10 = arith.constant 0 : index
    %9 = vector.load %arg5[%c0_9, %c0_10] : memref<1x32xf32, #tpu.memory_space<vmem>>, vector<1x32xf32>
    %cst_11 = arith.constant dense<0.000000e+00> : vector<16xf32>
    %10 = vector.multi_reduction <add>, %7, %cst_11 [1] : vector<16x32xf32> to vector<16xf32>
    %11 = vector.shape_cast %10 : vector<16xf32> to vector<16x1xf32>
    %cst_12 = arith.constant 3.200000e+01 : f32
    %12 = vector.broadcast %cst_12 : f32 to vector<16x1xf32>
    %13 = arith.divf %11, %12 : vector<16x1xf32>
    %14 = vector.broadcast %13 : vector<16x1xf32> to vector<16x32xf32>
    %15 = arith.subf %7, %14 : vector<16x32xf32>
    %16 = arith.mulf %15, %15 : vector<16x32xf32>
    %cst_13 = arith.constant dense<0.000000e+00> : vector<16xf32>
    %17 = vector.multi_reduction <add>, %16, %cst_13 [1] : vector<16x32xf32> to vector<16xf32>
    %18 = vector.shape_cast %17 : vector<16xf32> to vector<16x1xf32>
    %cst_14 = arith.constant 3.200000e+01 : f32
    %19 = vector.broadcast %cst_14 : f32 to vector<16x1xf32>
    %20 = arith.divf %18, %19 : vector<16x1xf32>
    %cst_15 = arith.constant 9.99999974E-6 : f32
    %21 = vector.broadcast %cst_15 : f32 to vector<16x1xf32>
    %22 = arith.addf %20, %21 : vector<16x1xf32>
    %23 = math.rsqrt %22 : vector<16x1xf32>
    %24 = vector.broadcast %23 : vector<16x1xf32> to vector<16x32xf32>
    %25 = arith.mulf %15, %24 : vector<16x32xf32>
    %26 = vector.broadcast %8 : vector<1x32xf32> to vector<16x32xf32>
    %27 = arith.mulf %25, %26 : vector<16x32xf32>
    %28 = vector.broadcast %9 : vector<1x32xf32> to vector<16x32xf32>
    %29 = arith.addf %27, %28 : vector<16x32xf32>
    %c0_16 = arith.constant 0 : index
    %c0_17 = arith.constant 0 : index
    %30 = vector.load %arg6[%c0_16, %c0_17] : memref<16x32xf32, #tpu.memory_space<vmem>>, vector<16x32xf32>
    tpu.vector_store %arg6[%c0_16, %c0_17], %29 {strides = array<i32>} : memref<16x32xf32, #tpu.memory_space<vmem>>, vector<16x32xf32>,
    return
  }
  func.func @transform_0(%arg0: i32) -> (i32, i32) {
    %c0_i32 = arith.constant 0 : i32
    %c0_i32_0 = arith.constant 0 : i32
    return %arg0, %c0_i32 : i32, i32
  }
  func.func @transform_1(%arg0: i32) -> (i32, i32) {
    %c0_i32 = arith.constant 0 : i32
    %c0_i32_0 = arith.constant 0 : i32
    %c0_i32_1 = arith.constant 0 : i32
    return %c0_i32, %c0_i32_0 : i32, i32
  }
  func.func @transform_2(%arg0: i32) -> (i32, i32) {
    %c0_i32 = arith.constant 0 : i32
    %c0_i32_0 = arith.constant 0 : i32
    %c0_i32_1 = arith.constant 0 : i32
    return %c0_i32, %c0_i32_0 : i32, i32
  }
  func.func @transform_3(%arg0: i32) -> (i32, i32) {
    %c0_i32 = arith.constant 0 : i32
    %c0_i32_0 = arith.constant 0 : i32
    %c0_i32_1 = arith.constant 0 : i32
    return %c0_i32, %c0_i32_0 : i32, i32
  }
  func.func @transform_4(%arg0: i32) -> (i32, i32) {
    %c0_i32 = arith.constant 0 : i32
    %c0_i32_0 = arith.constant 0 : i32
    %c0_i32_1 = arith.constant 0 : i32
    return %c0_i32, %c0_i32_0 : i32, i32
  }
  func.func @transform_5(%arg0: i32) -> (i32, i32) {
    %c0_i32 = arith.constant 0 : i32
    %c0_i32_0 = arith.constant 0 : i32
    return %arg0, %c0_i32 : i32, i32
  }
}

</mosaic_0001>

<bundles_post_ra>
// kernel: tpu_custom_call.1
= control target key start
LH: loop header
LB: loop body
LE: loop exit
PB: predicated region body
PF: predicated region fallthrough
CT: control target
= control target key end

     0   :  { %10 = vsyncpa [#allocation3], 0  ;;  %s378_s0 = inlined_call_operand.hbm [shape: f32[16,32], index: 0, kind: input, shape index: {}]   ;;  %s379_s1 = inlined_call_operand.hbm [shape: f32[32,32], index: 1, kind: input, shape index: {}]   ;;  %s380_s2 = inlined_call_operand.vmem [shape: f32[1,32], index: 2, kind: input, shape index: {}]   ;;  %s381_s3 = inlined_call_operand.vmem [shape: f32[1,32], index: 3, kind: input, shape index: {}]   ;;  %s382_s4 = inlined_call_operand.vmem [shape: f32[1,32], index: 4, kind: input, shape index: {}]   ;;  %s383_s5 = inlined_call_operand.hbm [shape: f32[16,32], index: 5, kind: output, shape index: {}]  }
   0x1   :  { %11 = vsyncpa [#allocation6], 0 }
   0x2   :  { %12 = vsyncpa [#allocation4], 0  ;;  %s308_s18 = smov [#allocation2]  }
   0x3   :  { %s18_s19 = sshll.u32 %s308_s18, 4  ;;  %s19_s19 = int_to_ptr.vmem [resolvable:$true] %s18_s19 }
   0x4   :  { %s250_s20 = scalar_lea.vmem %s19_s19, 256  ;;  %p255_p1 = scmp.lt.s32.totalorder %s19_s19, %s19_s19 }
   0x5   :  { %p251_p0 = scmp.ne.s32.totalorder %s19_s19, %s250_s20  ;;  %p256_p2 = scmp.lt.s32.totalorder %s250_s20, %s250_s20 }
   0x7   :  { %p257_p3 = por %p256_p2, %p255_p1 }
   0x9   :  { %p258_p4 = pnand %p257_p3, %p251_p0 }
   0xb   :  { %261 = shalt.err (!%p258_p4)
}
   0xc   :  { %s309_s21 = smov 128   ;;  %s310_s22 = smov 8  }
   0xd   :  { %24 = dma.hbm_to_vmem [thread:$0]  %s378_s0, 256, %s19_s19, [#allocation3], %s309_s21, %s309_s21, %s310_s22  }
   0xe   :  { %s311_s25 = smov [#allocation5]  }
   0xf   :  { %s30_s26 = sshll.u32 %s311_s25, 4  ;;  %s31_s26 = int_to_ptr.vmem [resolvable:$true] %s30_s26 }
  0x10   :  { %s270_s27 = scalar_lea.vmem %s31_s26, 512  ;;  %p275_p6 = scmp.lt.s32.totalorder %s31_s26, %s31_s26 }
  0x11   :  { %p271_p5 = scmp.ne.s32.totalorder %s31_s26, %s270_s27  ;;  %p276_p7 = scmp.lt.s32.totalorder %s270_s27, %s270_s27 }
  0x13   :  { %p277_p8 = por %p276_p7, %p275_p6 }
  0x15   :  { %p278_p9 = pnand %p277_p8, %p271_p5 }
  0x17   :  { %281 = shalt.err (!%p278_p9)
}
  0x18   :  { %36 = dma.hbm_to_vmem [thread:$0]  %s379_s1, 512, %s31_s26, [#allocation6], %s309_s21, %s309_s21, %s310_s22  }
  0x19   :  { %302 = dma.done.wait [#allocation3], 256  }
  0x1a   :  { %303 = vsyncadd [#allocation3], 4294967040 }
  0x1b   :  { %304 = dma.done.wait [#allocation6], 512  }
  0x1c   :  { %305 = vsyncadd [#allocation6], 4294966784  ;;  %vm62_vm0 = vcmask 261120   ;;  %v54_v0 = vld [vmem:[#allocation5 + $0x18] sm:$0xff]  ;;  %v53_v1 = vld [vmem:[#allocation5 + $0x10] sm:$0xff]  ;;  %s312_s8 = smov [#allocation7]  }
  0x1d   :  { %222 = vmatprep.subr.mxu0 %v54_v0  ;;  %v49_v2 = vld [vmem:[#allocation2] sm:$0xff]  ;;  %v52_v3 = vld [vmem:[#allocation5 + $0x8] sm:$0xff]  ;;  %v51_v4 = vld [vmem:[#allocation5] sm:$0xff]  ;;  %s198_s9 = sshll.u32 %s312_s8, 4  ;;  %s199_s9 = int_to_ptr.vmem [resolvable:$true] %s198_s9 }
  0x1e   :  { %223 = vmatpush3.msra.mxu0 %v54_v0  ;;  %230 = vmatprep.mubr.msk.f32.mxu0 %vm62_vm0, %v49_v2  ;;  %v50_v5 = vld [vmem:[#allocation2 + $0x8] sm:$0xff]  ;;  %v211_v7 = vld [vmem:[%s380_s2] ss:$0 sm:$0xff]  ;;  %s282_s10 = scalar_lea.vmem %s199_s9, 256  ;;  %p287_p11 = scmp.lt.s32.totalorder %s199_s9, %s199_s9 }
  0x1f   :  { %224 = vmatprep.subr.mxu0 %v53_v1  ;;  %v214_v32 = vld [vmem:[%s381_s3] ss:$0 sm:$0xff]  ;;  %p283_p10 = scmp.ne.s32.totalorder %s199_s9, %s282_s10  ;;  %p288_p12 = scmp.lt.s32.totalorder %s282_s10, %s282_s10 }
  0x20   :  { %225 = vmatpush3.msra.mxu0 %v53_v1  ;;  %v215_v34 = vld [vmem:[%s382_s4] ss:$0 sm:$0xff] }
  0x21   :  { %226 = vmatprep.subr.mxu0 %v52_v3  ;;  %p289_p13 = por %p288_p12, %p287_p11 }
  0x22   :  { %227 = vmatpush3.msra.mxu0 %v52_v3 }
  0x23   :  { %228 = vmatprep.subr.mxu0 %v51_v4  ;;  %p290_p0 = pnand %p289_p13, %p283_p10 }
  0x24   :  { %229 = vmatpush3.msra.mxu0 %v51_v4 }
  0x25   :  { %231 = vmatmul.mubr.msk.f32.vlgmr.msra.gmra.mxu0 %vm62_vm0, %v50_v5 }
  0xe5   :  { %v232_v6 = vpop.f32.mrf.mxu0 }
  0xe6   :  { %v141_v9 = vadd.f32 %v232_v6, %v211_v7 }
  0xe7   :  { %v135_v8 = vpop.f32.mrf.mxu0 }
  0xe8   :  { %v136_v10 = vadd.f32 %v211_v7, %v135_v8  ;;  %v145_v13 = vadd.f32 %v141_v9, %v50_v5 }
  0xea   :  { %v144_v11 = vadd.f32 %v136_v10, %v49_v2  ;;  %v151_v14 = vsel %vm62_vm0, %v145_v13, 0.0 }
  0xec   :  { %v148_v12 = vsel %vm62_vm0, %v144_v11, 0.0 }
  0xed   :  { %149 = vadd.xlane.f32.xlu0 %v148_v12 }
  0xf1   :  { %152 = vadd.xlane.f32.xlu0 %v151_v14 }
 0x176   :  { %v150_v15 = vpop.xlane.xlu0 %149 }
 0x177   :  { %v155_v16 = vmul.f32 0.03125, %v150_v15 }
 0x179   :  { %v157_v17 = vsub.f32 %v144_v11, %v155_v16 }
 0x17a   :  { %v153_v18 = vpop.xlane.xlu0 %152 }
 0x17b   :  { %v156_v19 = vmul.f32 0.03125, %v153_v18  ;;  %v159_v20 = vmul.f32 %v157_v17, %v157_v17 }
 0x17d   :  { %v158_v21 = vsub.f32 %v145_v13, %v156_v19  ;;  %v161_v22 = vsel %vm62_vm0, %v159_v20, 0.0 }
 0x17e   :  { %162 = vadd.xlane.f32.xlu1 %v161_v22 }
 0x17f   :  { %v160_v23 = vmul.f32 %v158_v21, %v158_v21 }
 0x181   :  { %v164_v24 = vsel %vm62_vm0, %v160_v23, 0.0 }
 0x182   :  { %165 = vadd.xlane.f32.xlu1 %v164_v24 }
 0x207   :  { %v163_v25 = vpop.xlane.xlu1 %162 }
 0x208   :  { %v167_v26 = vmul.f32 0.03125, %v163_v25 }
 0x20a   :  { %v169_v27 = vadd.f32 1e-05, %v167_v26 }
 0x20b   :  { %v166_v28 = vpop.xlane.xlu1 %165 }
 0x20c   :  { %238 = vrsqrt.f32 %v169_v27  ;;  %v168_v29 = vmul.f32 0.03125, %v166_v28 }
 0x20e   :  { %v170_v30 = vadd.f32 1e-05, %v168_v29 }
 0x210   :  { %240 = vrsqrt.f32 %v170_v30 }
 0x219   :  { %v239_v31 = vpop.eup %238 }
 0x21a   :  { %v173_v33 = vmul.f32 %v239_v31, %v157_v17 }
 0x21c   :  { %v181_v35 = vmul.f32 %v214_v32, %v173_v33 }
 0x21d   :  { %v241_v36 = vpop.eup %240 }
 0x21e   :  { %v174_v37 = vmul.f32 %v241_v36, %v158_v21  ;;  %v189_v38 = vadd.f32 %v215_v34, %v181_v35 }
 0x220   :  { %v182_v39 = vmul.f32 %v214_v32, %v174_v37  ;;  %191 = vst.msk [vmem:[#allocation7] sm:$0xff] %vm62_vm0, %v189_v38 }
 0x222   :  { %v190_v40 = vadd.f32 %v215_v34, %v182_v39 }
 0x224   :  { %192 = vst.msk [vmem:[#allocation7 + $0x8] sm:$0xff] %vm62_vm0, %v190_v40 }
 0x225   :  { %293 = shalt.err (!%p290_p0)
}
 0x226   :  { %204 = dma.vmem_to_hbm [thread:$0]  %s199_s9, 256, %s383_s5, [#allocation4], %s309_s21, %s309_s21, %s310_s22  }
 0x227   :  { %306 = dma.done.wait [#allocation4], 256  }
 0x228   :  { %307 = vsyncadd [#allocation4], 4294967040 }
 0x229   :  { %208 = vsyncpa [#allocation3], 1 }
 0x22a   :  { %209 = vsyncpa [#allocation6], 1 }
 0x22b   :  { %210 = vsyncpa [#allocation4], 1 }

</bundles_post_ra>
